<compile_context>
chip_gen: v7x
topology: tpu7x:2x2x1
jax: 0.10.0
libtpu: 0.0.40
codegen_flags: <defaults>
</compile_context>

<pallas_src>
import functools

import jax
import jax.numpy as jnp
from jax.experimental import pallas as pl
from jax.experimental.pallas import tpu as pltpu


HIDDEN = 128
LANE = 128


# ----------------------------------------------------------------------------
# Device heuristics (python/trace-time only)
# ----------------------------------------------------------------------------
def _device_kind():
    try:
        return jax.devices()[0].device_kind.lower()
    except Exception:
        return ""


def _num_tensorcores():
    # v7x exposes 2 TensorCores per chip; v5e/v6e have 1.
    return 2 if "v7" in _device_kind() else 1


def _has_bf16_vpu():
    # v6e/v7x VPUs support bf16 elementwise; v5e does not (keep f32 there).
    kind = _device_kind()
    return ("v6" in kind) or ("v7" in kind)


# ----------------------------------------------------------------------------
# Kernel
# ----------------------------------------------------------------------------
def _actor_kernel(scale_ref,
                  x_ref,
                  w1_ref, b1_ref,
                  w2_ref, b2_ref,
                  w3_ref, b3_ref,
                  w4_ref, b4_ref,
                  o_ref,
                  *, bf16_elementwise):
    max_action = scale_ref[0, 0]

    def dense_relu(h_bf16, w_ref, b_ref):
        # bf16 MXU operands, f32 accumulation.
        acc = jnp.dot(h_bf16, w_ref[...], preferred_element_type=jnp.float32)
        if bf16_elementwise:
            # bf16 bias-add + ReLU (v6e/v7x): halves VALU traffic & vreg use.
            h = jnp.maximum(acc.astype(jnp.bfloat16)
                            + b_ref[...].astype(jnp.bfloat16), 0.0)
            return h                      # already bf16 for the next matmul
        h = jnp.maximum(acc + b_ref[...], 0.0)
        return h.astype(jnp.bfloat16)

    h = dense_relu(x_ref[...].astype(jnp.bfloat16), w1_ref, b1_ref)
    h = dense_relu(h, w2_ref, b2_ref)
    h = dense_relu(h, w3_ref, b3_ref)

    # Final layer: f32 bias + tanh, scaled; output block is lane-dense (128).
    a = jnp.dot(h, w4_ref[...], preferred_element_type=jnp.float32)
    a = a + b4_ref[...]
    o_ref[...] = (max_action * jnp.tanh(a)).astype(o_ref.dtype)


# ----------------------------------------------------------------------------
# One-time parameter preparation (hoisted out of the per-call path)
# ----------------------------------------------------------------------------
def prepare_actor_params(params):
    """Cast w1..w3 to bf16 and lane-pad the final layer ONCE (store & reuse)."""
    act_dim = params["w4"].shape[1]
    act_pad = ((act_dim + LANE - 1) // LANE) * LANE

    w4 = jnp.zeros((HIDDEN, act_pad), jnp.bfloat16).at[:, :act_dim].set(
        params["w4"].astype(jnp.bfloat16))
    b4 = jnp.zeros((1, act_pad), jnp.float32).at[:, :act_dim].set(
        params["b4"].astype(jnp.float32))

    return dict(
        w1=params["w1"].astype(jnp.bfloat16), b1=params["b1"].astype(jnp.float32),
        w2=params["w2"].astype(jnp.bfloat16), b2=params["b2"].astype(jnp.float32),
        w3=params["w3"].astype(jnp.bfloat16), b3=params["b3"].astype(jnp.float32),
        w4=w4, b4=b4,
    )


# ----------------------------------------------------------------------------
# Forward wrapper (jit this so the final slice fuses with the consumer)
# ----------------------------------------------------------------------------
def actor_forward(x, prepped, max_action, *, act_dim,
                  num_tiles=None, bf16_elementwise=None,
                  out_dtype=jnp.bfloat16):
    """x: (B, obs_dim) f32.  prepped: output of prepare_actor_params."""
    B, obs_dim = x.shape
    act_pad = prepped["w4"].shape[1]

    if num_tiles is None:
        num_tiles = _num_tensorcores()          # one grid step per TensorCore
    if bf16_elementwise is None:
        bf16_elementwise = _has_bf16_vpu()

    # Batch tile = ceil(B / num_tiles), rounded to a multiple of 16 (covers the
    # bf16 (16,128) / f32 (8,128) sublane tiling).  grid == num_tiles.
    num_tiles = max(1, min(num_tiles, pl.cdiv(B, 16)))
    tb = ((pl.cdiv(B, num_tiles) + 15) // 16) * 16
    b_pad = tb * num_tiles
    if b_pad != B:
        x = jnp.pad(x, ((0, b_pad - B), (0, 0)))

    scale = jnp.full((1, 1), max_action, jnp.float32)

    # Constant index_map -> weights/biases are DMA'd once (first grid step) and
    # stay VMEM-resident; Pallas skips re-fetch when the block index repeats.
    full = lambda shape: pl.BlockSpec(shape, lambda i: (0, 0))

    kernel = functools.partial(_actor_kernel, bf16_elementwise=bf16_elementwise)

    out = pl.pallas_call(
        kernel,
        out_shape=jax.ShapeDtypeStruct((b_pad, act_pad), out_dtype),
        grid=(num_tiles,),
        in_specs=[
            pl.BlockSpec((1, 1), lambda i: (0, 0),
                         memory_space=pltpu.MemorySpace.SMEM),   # max_action
            pl.BlockSpec((tb, obs_dim), lambda i: (i, 0)),       # x tile
            full((obs_dim, HIDDEN)), full((1, HIDDEN)),          # fc1
            full((HIDDEN, HIDDEN)), full((1, HIDDEN)),           # fc2
            full((HIDDEN, HIDDEN)), full((1, HIDDEN)),           # fc3
            full((HIDDEN, act_pad)), full((1, act_pad)),         # action_out
        ],
        out_specs=pl.BlockSpec((tb, act_pad), lambda i: (i, 0)),
        compiler_params=pltpu.CompilerParams(
            dimension_semantics=("parallel",)),
    )(
        scale, x,
        prepped["w1"], prepped["b1"],
        prepped["w2"], prepped["b2"],
        prepped["w3"], prepped["b3"],
        prepped["w4"], prepped["b4"],
    )
    # Under jit this slice fuses with the consumer (no extra HBM copy).
    return out[:B, :act_dim]


# ----------------------------------------------------------------------------
# Test harness
# ----------------------------------------------------------------------------
def init_actor_params(key, obs_dim, act_dim):
    """Deterministic synthetic parameters (PyTorch-style uniform fan-in init)."""
    ks = jax.random.split(key, 8)

    def linear(kw, kb, fan_in, fan_out):
        bound = 1.0 / jnp.sqrt(jnp.float32(fan_in))
        w = jax.random.uniform(kw, (fan_in, fan_out), jnp.float32, -bound, bound)
        b = jax.random.uniform(kb, (1, fan_out), jnp.float32, -bound, bound)
        return w, b

    w1, b1 = linear(ks[0], ks[1], obs_dim, HIDDEN)
    w2, b2 = linear(ks[2], ks[3], HIDDEN, HIDDEN)
    w3, b3 = linear(ks[4], ks[5], HIDDEN, HIDDEN)
    w4, b4 = linear(ks[6], ks[7], HIDDEN, act_dim)
    return dict(w1=w1, b1=b1, w2=w2, b2=b2, w3=w3, b3=b3, w4=w4, b4=b4)


def actor_forward_ref(x, params, max_action, *, use_bf16=True):
    def mm(a, w):
        if use_bf16:
            return jnp.dot(a.astype(jnp.bfloat16), w.astype(jnp.bfloat16),
                           preferred_element_type=jnp.float32)
        return jnp.dot(a, w, preferred_element_type=jnp.float32)

    h = jax.nn.relu(mm(x, params["w1"]) + params["b1"])
    h = jax.nn.relu(mm(h, params["w2"]) + params["b2"])
    h = jax.nn.relu(mm(h, params["w3"]) + params["b3"])
    return max_action * jnp.tanh(mm(h, params["w4"]) + params["b4"])


if __name__ == "__main__":
    key = jax.random.PRNGKey(0)
    k_x, k_p = jax.random.split(key)

    batch = 256        # batched observations (amortizes launch overhead)
    obs_dim = 16       # args.obs_shape[agent_id]
    act_dim = 8        # args.action_shape[agent_id]
    max_action = 1.0   # args.high_action

    x = jax.random.normal(k_x, (batch, obs_dim), jnp.float32)
    params = init_actor_params(k_p, obs_dim, act_dim)

    # One-time weight prep (bf16 cast + lane pad) -- reused across every call.
    prepped = prepare_actor_params(params)

    fwd = jax.jit(functools.partial(actor_forward, act_dim=act_dim))
    actions = fwd(x, prepped, jnp.float32(max_action))
    actions = jax.block_until_ready(actions)

    assert actions.shape == (batch, act_dim)

    # Check against a bf16-consistent reference (tight) and pure-f32 ref (loose).
    a32 = actions.astype(jnp.float32)
    ref_bf16 = actor_forward_ref(x, params, max_action, use_bf16=True)
    ref_f32 = actor_forward_ref(x, params, max_action, use_bf16=False)
    assert jnp.max(jnp.abs(a32 - ref_bf16)) < 2e-2
    assert jnp.max(jnp.abs(a32 - ref_f32)) < 5e-2

    print("KERNEL_OK")
</pallas_src>

<mosaic_0001>
module attributes {stable_mosaic.version = 11 : i64} {
  func.func @_actor_kernel(%arg0: i32, %arg1: memref<1x1xf32, #tpu.memory_space<smem>>, %arg2: memref<256x16xf32, #tpu.memory_space<vmem>>, %arg3: memref<16x128xbf16, #tpu.memory_space<vmem>>, %arg4: memref<1x128xf32, #tpu.memory_space<vmem>>, %arg5: memref<128x128xbf16, #tpu.memory_space<vmem>>, %arg6: memref<1x128xf32, #tpu.memory_space<vmem>>, %arg7: memref<128x128xbf16, #tpu.memory_space<vmem>>, %arg8: memref<1x128xf32, #tpu.memory_space<vmem>>, %arg9: memref<128x128xbf16, #tpu.memory_space<vmem>>, %arg10: memref<1x128xf32, #tpu.memory_space<vmem>>, %arg11: memref<256x128xbf16, #tpu.memory_space<vmem>>) attributes {dimension_semantics = [#tpu.dimension_semantics<parallel>], iteration_bounds = array<i64: 1>, scalar_prefetch = 0 : i64, scratch_operands = 0 : i64, tpu.core_type = #tpu.core_type<tc>, window_params = [{transform_indices = @transform_0, window_bounds = array<i64: 1, 1>}, {transform_indices = @transform_1, window_bounds = array<i64: 256, 16>}, {pipeline_mode = #tpu.pipeline_mode<synchronous>, transform_indices = @transform_2, window_bounds = array<i64: 16, 128>}, {pipeline_mode = #tpu.pipeline_mode<synchronous>, transform_indices = @transform_3, window_bounds = array<i64: 1, 128>}, {pipeline_mode = #tpu.pipeline_mode<synchronous>, transform_indices = @transform_4, window_bounds = array<i64: 128, 128>}, {pipeline_mode = #tpu.pipeline_mode<synchronous>, transform_indices = @transform_5, window_bounds = array<i64: 1, 128>}, {pipeline_mode = #tpu.pipeline_mode<synchronous>, transform_indices = @transform_6, window_bounds = array<i64: 128, 128>}, {pipeline_mode = #tpu.pipeline_mode<synchronous>, transform_indices = @transform_7, window_bounds = array<i64: 1, 128>}, {pipeline_mode = #tpu.pipeline_mode<synchronous>, transform_indices = @transform_8, window_bounds = array<i64: 128, 128>}, {pipeline_mode = #tpu.pipeline_mode<synchronous>, transform_indices = @transform_9, window_bounds = array<i64: 1, 128>}, {transform_indices = @transform_10, window_bounds = array<i64: 256, 128>}]} {
    %c0 = arith.constant 0 : index
    %c0_0 = arith.constant 0 : index
    %0 = memref.load %arg1[%c0, %c0_0] : memref<1x1xf32, #tpu.memory_space<smem>>
    %c0_1 = arith.constant 0 : index
    %c0_2 = arith.constant 0 : index
    %1 = vector.load %arg2[%c0_1, %c0_2] : memref<256x16xf32, #tpu.memory_space<vmem>>, vector<256x16xf32>
    %2 = arith.truncf %1 : vector<256x16xf32> to vector<256x16xbf16>
    %c0_3 = arith.constant 0 : index
    %c0_4 = arith.constant 0 : index
    %3 = vector.load %arg3[%c0_3, %c0_4] : memref<16x128xbf16, #tpu.memory_space<vmem>>, vector<16x128xbf16>
    %cst = arith.constant dense<0.000000e+00> : vector<256x128xf32>
    %4 = tpu.matmul %2, %3, %cst {dimension_numbers = #tpu.dot_dimension_numbers<[1], [0], [0], [1], [0, 0, 1, 1], [], []>} : vector<256x16xbf16>, vector<16x128xbf16>, vector<256x128xf32> -> vector<256x128xf32>
    %c0_5 = arith.constant 0 : index
    %c0_6 = arith.constant 0 : index
    %5 = vector.load %arg4[%c0_5, %c0_6] : memref<1x128xf32, #tpu.memory_space<vmem>>, vector<1x128xf32>
    %6 = vector.broadcast %5 : vector<1x128xf32> to vector<256x128xf32>
    %7 = arith.addf %4, %6 : vector<256x128xf32>
    %cst_7 = arith.constant 0.000000e+00 : f32
    %8 = vector.broadcast %cst_7 : f32 to vector<256x128xf32>
    %9 = arith.maximumf %7, %8 : vector<256x128xf32>
    %10 = arith.truncf %9 : vector<256x128xf32> to vector<256x128xbf16>
    %c0_8 = arith.constant 0 : index
    %c0_9 = arith.constant 0 : index
    %11 = vector.load %arg5[%c0_8, %c0_9] : memref<128x128xbf16, #tpu.memory_space<vmem>>, vector<128x128xbf16>
    %cst_10 = arith.constant dense<0.000000e+00> : vector<256x128xf32>
    %12 = tpu.matmul %10, %11, %cst_10 {dimension_numbers = #tpu.dot_dimension_numbers<[1], [0], [0], [1], [0, 0, 1, 1], [], []>} : vector<256x128xbf16>, vector<128x128xbf16>, vector<256x128xf32> -> vector<256x128xf32>
    %c0_11 = arith.constant 0 : index
    %c0_12 = arith.constant 0 : index
    %13 = vector.load %arg6[%c0_11, %c0_12] : memref<1x128xf32, #tpu.memory_space<vmem>>, vector<1x128xf32>
    %14 = vector.broadcast %13 : vector<1x128xf32> to vector<256x128xf32>
    %15 = arith.addf %12, %14 : vector<256x128xf32>
    %cst_13 = arith.constant 0.000000e+00 : f32
    %16 = vector.broadcast %cst_13 : f32 to vector<256x128xf32>
    %17 = arith.maximumf %15, %16 : vector<256x128xf32>
    %18 = arith.truncf %17 : vector<256x128xf32> to vector<256x128xbf16>
    %c0_14 = arith.constant 0 : index
    %c0_15 = arith.constant 0 : index
    %19 = vector.load %arg7[%c0_14, %c0_15] : memref<128x128xbf16, #tpu.memory_space<vmem>>, vector<128x128xbf16>
    %cst_16 = arith.constant dense<0.000000e+00> : vector<256x128xf32>
    %20 = tpu.matmul %18, %19, %cst_16 {dimension_numbers = #tpu.dot_dimension_numbers<[1], [0], [0], [1], [0, 0, 1, 1], [], []>} : vector<256x128xbf16>, vector<128x128xbf16>, vector<256x128xf32> -> vector<256x128xf32>
    %c0_17 = arith.constant 0 : index
    %c0_18 = arith.constant 0 : index
    %21 = vector.load %arg8[%c0_17, %c0_18] : memref<1x128xf32, #tpu.memory_space<vmem>>, vector<1x128xf32>
    %22 = vector.broadcast %21 : vector<1x128xf32> to vector<256x128xf32>
    %23 = arith.addf %20, %22 : vector<256x128xf32>
    %cst_19 = arith.constant 0.000000e+00 : f32
    %24 = vector.broadcast %cst_19 : f32 to vector<256x128xf32>
    %25 = arith.maximumf %23, %24 : vector<256x128xf32>
    %26 = arith.truncf %25 : vector<256x128xf32> to vector<256x128xbf16>
    %c0_20 = arith.constant 0 : index
    %c0_21 = arith.constant 0 : index
    %27 = vector.load %arg9[%c0_20, %c0_21] : memref<128x128xbf16, #tpu.memory_space<vmem>>, vector<128x128xbf16>
    %cst_22 = arith.constant dense<0.000000e+00> : vector<256x128xf32>
    %28 = tpu.matmul %26, %27, %cst_22 {dimension_numbers = #tpu.dot_dimension_numbers<[1], [0], [0], [1], [0, 0, 1, 1], [], []>} : vector<256x128xbf16>, vector<128x128xbf16>, vector<256x128xf32> -> vector<256x128xf32>
    %c0_23 = arith.constant 0 : index
    %c0_24 = arith.constant 0 : index
    %29 = vector.load %arg10[%c0_23, %c0_24] : memref<1x128xf32, #tpu.memory_space<vmem>>, vector<1x128xf32>
    %30 = vector.broadcast %29 : vector<1x128xf32> to vector<256x128xf32>
    %31 = arith.addf %28, %30 : vector<256x128xf32>
    %32 = math.tanh %31 : vector<256x128xf32>
    %33 = vector.broadcast %0 : f32 to vector<256x128xf32>
    %34 = arith.mulf %33, %32 : vector<256x128xf32>
    %35 = arith.truncf %34 : vector<256x128xf32> to vector<256x128xbf16>
    %c0_25 = arith.constant 0 : index
    %c0_26 = arith.constant 0 : index
    %36 = vector.load %arg11[%c0_25, %c0_26] : memref<256x128xbf16, #tpu.memory_space<vmem>>, vector<256x128xbf16>
    tpu.vector_store %arg11[%c0_25, %c0_26], %35 {strides = array<i32>} : memref<256x128xbf16, #tpu.memory_space<vmem>>, vector<256x128xbf16>,
    return
  }
  func.func @transform_0(%arg0: i32) -> (i32, i32) {
    %c0_i32 = arith.constant 0 : i32
    %c0_i32_0 = arith.constant 0 : i32
    %c0_i32_1 = arith.constant 0 : i32
    return %c0_i32, %c0_i32_0 : i32, i32
  }
  func.func @transform_1(%arg0: i32) -> (i32, i32) {
    %c0_i32 = arith.constant 0 : i32
    %c0_i32_0 = arith.constant 0 : i32
    return %arg0, %c0_i32 : i32, i32
  }
  func.func @transform_2(%arg0: i32) -> (i32, i32) {
    %c0_i32 = arith.constant 0 : i32
    %c0_i32_0 = arith.constant 0 : i32
    %c0_i32_1 = arith.constant 0 : i32
    return %c0_i32, %c0_i32_0 : i32, i32
  }
  func.func @transform_3(%arg0: i32) -> (i32, i32) {
    %c0_i32 = arith.constant 0 : i32
    %c0_i32_0 = arith.constant 0 : i32
    %c0_i32_1 = arith.constant 0 : i32
    return %c0_i32, %c0_i32_0 : i32, i32
  }
  func.func @transform_4(%arg0: i32) -> (i32, i32) {
    %c0_i32 = arith.constant 0 : i32
    %c0_i32_0 = arith.constant 0 : i32
    %c0_i32_1 = arith.constant 0 : i32
    return %c0_i32, %c0_i32_0 : i32, i32
  }
  func.func @transform_5(%arg0: i32) -> (i32, i32) {
    %c0_i32 = arith.constant 0 : i32
    %c0_i32_0 = arith.constant 0 : i32
    %c0_i32_1 = arith.constant 0 : i32
    return %c0_i32, %c0_i32_0 : i32, i32
  }
  func.func @transform_6(%arg0: i32) -> (i32, i32) {
    %c0_i32 = arith.constant 0 : i32
    %c0_i32_0 = arith.constant 0 : i32
    %c0_i32_1 = arith.constant 0 : i32
    return %c0_i32, %c0_i32_0 : i32, i32
  }
  func.func @transform_7(%arg0: i32) -> (i32, i32) {
    %c0_i32 = arith.constant 0 : i32
    %c0_i32_0 = arith.constant 0 : i32
    %c0_i32_1 = arith.constant 0 : i32
    return %c0_i32, %c0_i32_0 : i32, i32
  }
  func.func @transform_8(%arg0: i32) -> (i32, i32) {
    %c0_i32 = arith.constant 0 : i32
    %c0_i32_0 = arith.constant 0 : i32
    %c0_i32_1 = arith.constant 0 : i32
    return %c0_i32, %c0_i32_0 : i32, i32
  }
  func.func @transform_9(%arg0: i32) -> (i32, i32) {
    %c0_i32 = arith.constant 0 : i32
    %c0_i32_0 = arith.constant 0 : i32
    %c0_i32_1 = arith.constant 0 : i32
    return %c0_i32, %c0_i32_0 : i32, i32
  }
  func.func @transform_10(%arg0: i32) -> (i32, i32) {
    %c0_i32 = arith.constant 0 : i32
    %c0_i32_0 = arith.constant 0 : i32
    return %arg0, %c0_i32 : i32, i32
  }
}

</mosaic_0001>

<bundles_post_ra>
// kernel: actor_forward.1
= control target key start
LH: loop header
LB: loop body
LE: loop exit
PB: predicated region body
PF: predicated region fallthrough
CT: control target
= control target key end

     0   :  { %vm101_vm0 = vcmask 130048   ;;  %s2449_s2 = inlined_call_operand.vmem [shape: bf16[16,128], index: 2, kind: input, shape index: {}]   ;;  %s2450_s1 = inlined_call_operand.vmem [shape: f32[256,16], index: 1, kind: input, shape index: {}]   ;;  %s2451_s4 = inlined_call_operand.vmem [shape: bf16[128,128], index: 4, kind: input, shape index: {}]   ;;  %s2452_s6 = inlined_call_operand.vmem [shape: bf16[128,128], index: 6, kind: input, shape index: {}]   ;;  %s2453_s3 = inlined_call_operand.vmem [shape: f32[1,128], index: 3, kind: input, shape index: {}]   ;;  %s2454_s8 = inlined_call_operand.vmem [shape: bf16[128,128], index: 8, kind: input, shape index: {}]   ;;  %s2455_s5 = inlined_call_operand.vmem [shape: f32[1,128], index: 5, kind: input, shape index: {}]   ;;  %s2456_s7 = inlined_call_operand.vmem [shape: f32[1,128], index: 7, kind: input, shape index: {}]   ;;  %s2457_s9 = inlined_call_operand.vmem [shape: f32[1,128], index: 9, kind: input, shape index: {}]   ;;  %s2458_s0 = inlined_call_operand.<no memory space> [shape: f32[1,1], index: 0, kind: input, shape index: {}]   ;;  %s2459_s10 = inlined_call_operand.vmem [shape: bf16[256,128], index: 10, kind: output, shape index: {}]  }
   0x1   :  { %v1867_v0 = vld [vmem:[%s2449_s2] sm:$0xff]   ;;  %v39_v2 = vld [vmem:[%s2450_s1 + $0x8] sm:$0xff]  ;;  %v40_v3 = vld [vmem:[%s2450_s1 + $0x10] sm:$0xff] }
   0x2   :  { %v38_v1 = vld [vmem:[%s2450_s1] sm:$0xff]  ;;  %1673 = vmatprep.subr.bf16.mxu0 %v1867_v0  ;;  %v41_v5 = vld [vmem:[%s2450_s1 + $0x18] sm:$0xff]  ;;  %v43_v7 = vld [vmem:[%s2450_s1 + $0x28] sm:$0xff] }
   0x3   :  { %v70_v4 = vpack.c.bf16 %v39_v2, %v38_v1  ;;  %v42_v6 = vld [vmem:[%s2450_s1 + $0x20] sm:$0xff]  ;;  %1674 = vmatpush3.bf16.msra.mxu0 %v1867_v0  ;;  %v71_v8 = vpack.c.bf16 %v41_v5, %v40_v3  ;;  %v44_v10 = vld [vmem:[%s2450_s1 + $0x30] sm:$0xff]  ;;  %v45_v11 = vld [vmem:[%s2450_s1 + $0x38] sm:$0xff] }
   0x4   :  { %v72_v9 = vpack.c.bf16 %v43_v7, %v42_v6  ;;  %v46_v12 = vld [vmem:[%s2450_s1 + $0x40] sm:$0xff]  ;;  %v47_v13 = vld [vmem:[%s2450_s1 + $0x48] sm:$0xff]  ;;  %v73_v14 = vpack.c.bf16 %v45_v11, %v44_v10  ;;  %v48_v17 = vld [vmem:[%s2450_s1 + $0x50] sm:$0xff] }
   0x5   :  { %1675 = vmatprep.mubr.msk.bf16.mxu0 %vm101_vm0, %v70_v4  ;;  %v74_v15 = vpack.c.bf16 %v47_v13, %v46_v12  ;;  %v1868_v16 = vld [vmem:[%s2451_s4] sm:$0xff]   ;;  %v49_v18 = vld [vmem:[%s2450_s1 + $0x58] sm:$0xff]  ;;  %v1869_v19 = vld [vmem:[%s2451_s4 + $0x8] sm:$0xff]  }
   0x6   :  { %1676 = vmatmul.mubr.msk.bf16.vlgmr.msra.gmra.mrb[0].mxu0 %vm101_vm0, %v71_v8  ;;  %v50_v20 = vld [vmem:[%s2450_s1 + $0x60] sm:$0xff]  ;;  %1707 = vmatprep.subr.bf16.mxu1 %v1868_v16  ;;  %v51_v21 = vld [vmem:[%s2450_s1 + $0x68] sm:$0xff]  ;;  %v1870_v22 = vld [vmem:[%s2451_s4 + $0x10] sm:$0xff]   ;;  %v75_v23 = vpack.c.bf16 %v49_v18, %v48_v17 }
   0x7   :  { %1679 = vmatprep.mubr.msk.bf16.mxu0 %vm101_vm0, %v72_v9  ;;  %1708 = vmatpush3.bf16.msra.mxu1 %v1868_v16  ;;  %v76_v24 = vpack.c.bf16 %v51_v21, %v50_v20  ;;  %v1871_v25 = vld [vmem:[%s2451_s4 + $0x18] sm:$0xff]   ;;  %v52_v26 = vld [vmem:[%s2450_s1 + $0x70] sm:$0xff]  ;;  %v54_v28 = vld [vmem:[%s2450_s1 + $0x80] sm:$0xff] }
   0x8   :  { %1709 = vmatprep.subr.bf16.mxu1 %v1869_v19  ;;  %v53_v27 = vld [vmem:[%s2450_s1 + $0x78] sm:$0xff]  ;;  %v55_v29 = vld [vmem:[%s2450_s1 + $0x88] sm:$0xff]  ;;  %v1872_v30 = vld [vmem:[%s2451_s4 + $0x20] sm:$0xff]  }
   0x9   :  { %v77_v31 = vpack.c.bf16 %v53_v27, %v52_v26  ;;  %v78_v32 = vpack.c.bf16 %v55_v29, %v54_v28  ;;  %v1873_v33 = vld [vmem:[%s2451_s4 + $0x28] sm:$0xff]   ;;  %v56_v34 = vld [vmem:[%s2450_s1 + $0x90] sm:$0xff]  ;;  %v57_v35 = vld [vmem:[%s2450_s1 + $0x98] sm:$0xff] }
   0xa   :  { %v58_v36 = vld [vmem:[%s2450_s1 + $0xa0] sm:$0xff]  ;;  %v59_v37 = vld [vmem:[%s2450_s1 + $0xa8] sm:$0xff]  ;;  %v79_v38 = vpack.c.bf16 %v57_v35, %v56_v34  ;;  %v60_v40 = vld [vmem:[%s2450_s1 + $0xb0] sm:$0xff] }
   0xb   :  { %1710 = vmatpush3.bf16.msra.mxu1 %v1869_v19  ;;  %v80_v39 = vpack.c.bf16 %v59_v37, %v58_v36  ;;  %v61_v41 = vld [vmem:[%s2450_s1 + $0xb8] sm:$0xff]  ;;  %v62_v42 = vld [vmem:[%s2450_s1 + $0xc0] sm:$0xff]  ;;  %v63_v43 = vld [vmem:[%s2450_s1 + $0xc8] sm:$0xff] }
   0xc   :  { %1711 = vmatprep.subr.bf16.mxu1 %v1870_v22  ;;  %v81_v44 = vpack.c.bf16 %v61_v41, %v60_v40  ;;  %v82_v45 = vpack.c.bf16 %v63_v43, %v62_v42  ;;  %v64_v46 = vld [vmem:[%s2450_s1 + $0xd0] sm:$0xff]  ;;  %v65_v47 = vld [vmem:[%s2450_s1 + $0xd8] sm:$0xff]  ;;  %v66_v48 = vld [vmem:[%s2450_s1 + $0xe0] sm:$0xff] }
   0xd   :  { %v67_v49 = vld [vmem:[%s2450_s1 + $0xe8] sm:$0xff]  ;;  %v83_v50 = vpack.c.bf16 %v65_v47, %v64_v46  ;;  %v68_v52 = vld [vmem:[%s2450_s1 + $0xf0] sm:$0xff]  ;;  %v69_v53 = vld [vmem:[%s2450_s1 + $0xf8] sm:$0xff] }
   0xe   :  { %1680 = vmatmul.mubr.msk.bf16.gmra.mrb[4].mxu0 %vm101_vm0, %v73_v14  ;;  %v84_v51 = vpack.c.bf16 %v67_v49, %v66_v48  ;;  %v85_v54 = vpack.c.bf16 %v69_v53, %v68_v52  ;;  %v1874_v55 = vld [vmem:[%s2451_s4 + $0x30] sm:$0xff]   ;;  %v1875_v56 = vld [vmem:[%s2451_s4 + $0x38] sm:$0xff]   ;;  %v1876_v57 = vld [vmem:[%s2452_s6] sm:$0xff]  }
   0xf   :  { %1683 = vmatprep.mubr.msk.bf16.mxu0 %vm101_vm0, %v74_v15  ;;  %1712 = vmatpush3.bf16.msra.mxu1 %v1870_v22  ;;  %v1877_v58 = vld [vmem:[%s2452_s6 + $0x8] sm:$0xff]   ;;  %v1878_v59 = vld [vmem:[%s2452_s6 + $0x10] sm:$0xff]   ;;  %v1879_v60 = vld [vmem:[%s2452_s6 + $0x18] sm:$0xff]  }
  0x10   :  { %1713 = vmatprep.subr.bf16.mxu1 %v1871_v25  ;;  %1755 = vmatprep.subr.bf16.mxu0 %v1876_v57  ;;  %v1880_v61 = vld [vmem:[%s2452_s6 + $0x20] sm:$0xff]   ;;  %v1881_v62 = vld [vmem:[%s2452_s6 + $0x28] sm:$0xff]   ;;  %v1882_v63 = vld [vmem:[%s2452_s6 + $0x30] sm:$0xff]  }
  0x11   :  { %1756 = vmatpush3.bf16.msra.mxu0 %v1876_v57  ;;  %v2174_v0 = vld [vmem:[%s2453_s3] ss:$0 sm:$0xff] }
  0x12   :  { %1757 = vmatprep.subr.bf16.mxu0 %v1877_v58 }
  0x13   :  { %1714 = vmatpush3.bf16.msra.mxu1 %v1871_v25 }
  0x14   :  { %1715 = vmatprep.subr.bf16.mxu1 %v1872_v30 }
  0x15   :  { %1758 = vmatpush3.bf16.msra.mxu0 %v1877_v58 }
  0x16   :  { %1684 = vmatmul.mubr.msk.bf16.gmra.mrb[8].mxu0 %vm101_vm0, %v75_v23  ;;  %1759 = vmatprep.subr.bf16.mxu0 %v1878_v59 }
  0x17   :  { %1687 = vmatprep.mubr.msk.bf16.mxu0 %vm101_vm0, %v76_v24  ;;  %1716 = vmatpush3.bf16.msra.mxu1 %v1872_v30 }
  0x18   :  { %1717 = vmatprep.subr.bf16.mxu1 %v1873_v33 }
  0x19   :  { %1760 = vmatpush3.bf16.msra.mxu0 %v1878_v59 }
  0x1a   :  { %1761 = vmatprep.subr.bf16.mxu0 %v1879_v60 }
  0x1b   :  { %1718 = vmatpush3.bf16.msra.mxu1 %v1873_v33 }
  0x1c   :  { %1719 = vmatprep.subr.bf16.mxu1 %v1874_v55 }
  0x1d   :  { %1762 = vmatpush3.bf16.msra.mxu0 %v1879_v60 }
  0x1e   :  { %1688 = vmatmul.mubr.msk.bf16.gmra.mrb[12].mxu0 %vm101_vm0, %v77_v31  ;;  %1763 = vmatprep.subr.bf16.mxu0 %v1880_v61 }
  0x1f   :  { %1691 = vmatprep.mubr.msk.bf16.mxu0 %vm101_vm0, %v78_v32  ;;  %1720 = vmatpush3.bf16.msra.mxu1 %v1874_v55 }
  0x20   :  { %1721 = vmatprep.subr.bf16.mxu1 %v1875_v56 }
  0x21   :  { %1764 = vmatpush3.bf16.msra.mxu0 %v1880_v61 }
  0x22   :  { %1765 = vmatprep.subr.bf16.mxu0 %v1881_v62 }
  0x23   :  { %1722 = vmatpush3.bf16.msra.mxu1 %v1875_v56 }
  0x25   :  { %1766 = vmatpush3.bf16.msra.mxu0 %v1881_v62 }
  0x26   :  { %1692 = vmatmul.mubr.msk.bf16.gmra.mrb[16].mxu0 %vm101_vm0, %v79_v38  ;;  %1767 = vmatprep.subr.bf16.mxu0 %v1882_v63 }
  0x27   :  { %1695 = vmatprep.mubr.msk.bf16.mxu0 %vm101_vm0, %v80_v39 }
  0x29   :  { %1768 = vmatpush3.bf16.msra.mxu0 %v1882_v63 }
  0x2e   :  { %1696 = vmatmul.mubr.msk.bf16.gmra.mrb[20].mxu0 %vm101_vm0, %v81_v44 }
  0x2f   :  { %1699 = vmatprep.mubr.msk.bf16.mxu0 %vm101_vm0, %v82_v45 }
  0x36   :  { %1700 = vmatmul.mubr.msk.bf16.gmra.mrb[24].mxu0 %vm101_vm0, %v83_v50 }
  0x37   :  { %1703 = vmatprep.mubr.msk.bf16.mxu0 %vm101_vm0, %v84_v51 }
  0x3e   :  { %1704 = vmatmul.mubr.msk.bf16.gmra.mrb[28].mxu0 %vm101_vm0, %v85_v54 }
  0xd9   :  { %v1677_v1 = vpop.f32.mrb[0].mxu0 }
  0xda   :  { %v193_v2 = vadd.f32 %v1677_v1, %v2174_v0  ;;  %v184_v3 = vpop.f32.mrb[1].mxu0 }
  0xdb   :  { %v185_v4 = vadd.f32 %v2174_v0, %v184_v3  ;;  %v1678_v5 = vpop.f32.mrb[2].mxu0 }
  0xdc   :  { %v196_v6 = vadd.f32 %v1678_v5, %v2174_v0  ;;  %v187_v7 = vpop.f32.mrb[3].mxu0  ;;  %v313_v9 = vmax.f32 %v193_v2, 0.0 }
  0xdd   :  { %v188_v8 = vadd.f32 %v2174_v0, %v187_v7  ;;  %v311_v11 = vmax.f32 %v185_v4, 0.0 }
  0xde   :  { %v314_v10 = vmax.f32 %v196_v6, 0.0 }
  0xdf   :  { %v312_v12 = vmax.f32 %v188_v8, 0.0 }
  0xe0   :  { %v344_v13 = vpack.c.bf16 %v314_v10, %v313_v9 }
  0xe1   :  { %v1681_v14 = vpop.f32.mrb[4].mxu0  ;;  %v343_v15 = vpack.c.bf16 %v312_v12, %v311_v11 }
  0xe2   :  { %v209_v16 = vadd.f32 %v1681_v14, %v2174_v0  ;;  %v200_v17 = vpop.f32.mrb[5].mxu0 }
  0xe3   :  { %v201_v18 = vadd.f32 %v2174_v0, %v200_v17  ;;  %v1682_v19 = vpop.f32.mrb[6].mxu0  ;;  %1723 = vmatprep.mubr.bf16.mxu1 %v343_v15 }
  0xe4   :  { %v212_v20 = vadd.f32 %v1682_v19, %v2174_v0  ;;  %v203_v21 = vpop.f32.mrb[7].mxu0  ;;  %1724 = vmatmul.mubr.bf16.vlgmr.msra.gmra.mrb[0].mxu1 %v344_v13  ;;  %v317_v23 = vmax.f32 %v209_v16, 0.0 }
  0xe5   :  { %v204_v22 = vadd.f32 %v2174_v0, %v203_v21  ;;  %v315_v25 = vmax.f32 %v201_v18, 0.0 }
  0xe6   :  { %v318_v24 = vmax.f32 %v212_v20, 0.0 }
  0xe7   :  { %v316_v26 = vmax.f32 %v204_v22, 0.0 }
  0xe8   :  { %v346_v27 = vpack.c.bf16 %v318_v24, %v317_v23 }
  0xe9   :  { %v345_v28 = vpack.c.bf16 %v316_v26, %v315_v25  ;;  %v1685_v29 = vpop.f32.mrb[8].mxu0 }
  0xea   :  { %v225_v30 = vadd.f32 %v1685_v29, %v2174_v0  ;;  %v216_v31 = vpop.f32.mrb[9].mxu0 }
  0xeb   :  { %v217_v32 = vadd.f32 %v2174_v0, %v216_v31  ;;  %v1686_v33 = vpop.f32.mrb[10].mxu0  ;;  %1727 = vmatprep.mubr.bf16.mxu1 %v345_v28 }
  0xec   :  { %v228_v34 = vadd.f32 %v1686_v33, %v2174_v0  ;;  %v219_v35 = vpop.f32.mrb[11].mxu0  ;;  %1728 = vmatmul.mubr.bf16.gmra.mrb[4].mxu1 %v346_v27  ;;  %v321_v37 = vmax.f32 %v225_v30, 0.0 }
  0xed   :  { %v220_v36 = vadd.f32 %v2174_v0, %v219_v35  ;;  %v319_v39 = vmax.f32 %v217_v32, 0.0 }
  0xee   :  { %v322_v38 = vmax.f32 %v228_v34, 0.0 }
  0xef   :  { %v320_v40 = vmax.f32 %v220_v36, 0.0 }
  0xf0   :  { %v348_v41 = vpack.c.bf16 %v322_v38, %v321_v37 }
  0xf1   :  { %v347_v42 = vpack.c.bf16 %v320_v40, %v319_v39  ;;  %v1689_v43 = vpop.f32.mrb[12].mxu0 }
  0xf2   :  { %v241_v44 = vadd.f32 %v1689_v43, %v2174_v0  ;;  %v232_v45 = vpop.f32.mrb[13].mxu0 }
  0xf3   :  { %v233_v46 = vadd.f32 %v2174_v0, %v232_v45  ;;  %v1690_v47 = vpop.f32.mrb[14].mxu0  ;;  %1731 = vmatprep.mubr.bf16.mxu1 %v347_v42 }
  0xf4   :  { %v244_v48 = vadd.f32 %v1690_v47, %v2174_v0  ;;  %v235_v49 = vpop.f32.mrb[15].mxu0  ;;  %1732 = vmatmul.mubr.bf16.gmra.mrb[8].mxu1 %v348_v41  ;;  %v325_v51 = vmax.f32 %v241_v44, 0.0 }
  0xf5   :  { %v236_v50 = vadd.f32 %v2174_v0, %v235_v49  ;;  %v323_v53 = vmax.f32 %v233_v46, 0.0 }
  0xf6   :  { %v326_v52 = vmax.f32 %v244_v48, 0.0 }
  0xf7   :  { %v324_v54 = vmax.f32 %v236_v50, 0.0  ;;  %v1883_v50 = vld [vmem:[%s2452_s6 + $0x38] sm:$0xff]  }
  0xf8   :  { %v350_v55 = vpack.c.bf16 %v326_v52, %v325_v51  ;;  %1769 = vmatprep.subr.bf16.mxu0 %v1883_v50  ;;  %v1884_v51 = vld [vmem:[%s2454_s8] sm:$0xff]   ;;  %v1886_v52 = vld [vmem:[%s2454_s8 + $0x10] sm:$0xff]  }
  0xf9   :  { %v349_v56 = vpack.c.bf16 %v324_v54, %v323_v53  ;;  %v1693_v57 = vpop.f32.mrb[16].mxu0  ;;  %1770 = vmatpush3.bf16.msra.mxu0 %v1883_v50  ;;  %1851 = vmatprep.subr.bf16.mxu1 %v1884_v51  ;;  %v2223_v53 = vld [vmem:[%s2454_s8 + $0x18] sm:$0xff]   ;;  %v2229_v54 = vld [vmem:[%s2454_s8 + $0x20] sm:$0xff]  }
  0xfa   :  { %v257_v58 = vadd.f32 %v1693_v57, %v2174_v0  ;;  %v248_v59 = vpop.f32.mrb[17].mxu0  ;;  %1803 = vmatprep.subr.bf16.mxu0 %v1884_v51  ;;  %1859 = vmatpush3.bf16.msra.mxu1 %v1884_v51 }
  0xfb   :  { %v249_v60 = vadd.f32 %v2174_v0, %v248_v59  ;;  %v1694_v61 = vpop.f32.mrb[18].mxu0  ;;  %1735 = vmatprep.mubr.bf16.mxu1 %v349_v56  ;;  %v2244_v56 = vld [vmem:[%s2455_s5] ss:$0 sm:$0xff] }
  0xfc   :  { %v260_v62 = vadd.f32 %v1694_v61, %v2174_v0  ;;  %v251_v63 = vpop.f32.mrb[19].mxu0  ;;  %1736 = vmatmul.mubr.bf16.gmra.mrb[12].mxu1 %v350_v55  ;;  %v329_v2 = vmax.f32 %v257_v58, 0.0  ;;  %v2236_v55 = vld [vmem:[%s2454_s8 + $0x28] sm:$0xff]  }
  0xfd   :  { %v252_v1 = vadd.f32 %v2174_v0, %v251_v63  ;;  %v327_v4 = vmax.f32 %v249_v60, 0.0 }
  0xfe   :  { %v330_v3 = vmax.f32 %v260_v62, 0.0 }
  0xff   :  { %v328_v5 = vmax.f32 %v252_v1, 0.0 }
 0x100   :  { %v352_v6 = vpack.c.bf16 %v330_v3, %v329_v2 }
 0x101   :  { %v351_v7 = vpack.c.bf16 %v328_v5, %v327_v4  ;;  %v1697_v8 = vpop.f32.mrb[20].mxu0 }
 0x102   :  { %v273_v9 = vadd.f32 %v1697_v8, %v2174_v0  ;;  %v264_v10 = vpop.f32.mrb[21].mxu0 }
 0x103   :  { %v265_v11 = vadd.f32 %v2174_v0, %v264_v10  ;;  %v1698_v12 = vpop.f32.mrb[22].mxu0  ;;  %1739 = vmatprep.mubr.bf16.mxu1 %v351_v7 }
 0x104   :  { %v276_v13 = vadd.f32 %v1698_v12, %v2174_v0  ;;  %v267_v14 = vpop.f32.mrb[23].mxu0  ;;  %1740 = vmatmul.mubr.bf16.gmra.mrb[16].mxu1 %v352_v6  ;;  %v333_v16 = vmax.f32 %v273_v9, 0.0 }
 0x105   :  { %v268_v15 = vadd.f32 %v2174_v0, %v267_v14  ;;  %v331_v18 = vmax.f32 %v265_v11, 0.0 }
 0x106   :  { %v334_v17 = vmax.f32 %v276_v13, 0.0 }
 0x107   :  { %v332_v19 = vmax.f32 %v268_v15, 0.0 }
 0x108   :  { %v354_v20 = vpack.c.bf16 %v334_v17, %v333_v16 }
 0x109   :  { %v353_v21 = vpack.c.bf16 %v332_v19, %v331_v18  ;;  %v1701_v22 = vpop.f32.mrb[24].mxu0 }
 0x10a   :  { %v289_v23 = vadd.f32 %v1701_v22, %v2174_v0  ;;  %v280_v24 = vpop.f32.mrb[25].mxu0 }
 0x10b   :  { %v281_v25 = vadd.f32 %v2174_v0, %v280_v24  ;;  %v1702_v26 = vpop.f32.mrb[26].mxu0  ;;  %1743 = vmatprep.mubr.bf16.mxu1 %v353_v21 }
 0x10c   :  { %v292_v27 = vadd.f32 %v1702_v26, %v2174_v0  ;;  %v283_v28 = vpop.f32.mrb[27].mxu0  ;;  %1744 = vmatmul.mubr.bf16.gmra.mrb[20].mxu1 %v354_v20  ;;  %v337_v30 = vmax.f32 %v289_v23, 0.0 }
 0x10d   :  { %v284_v29 = vadd.f32 %v2174_v0, %v283_v28  ;;  %v335_v32 = vmax.f32 %v281_v25, 0.0 }
 0x10e   :  { %v338_v31 = vmax.f32 %v292_v27, 0.0 }
 0x10f   :  { %v336_v33 = vmax.f32 %v284_v29, 0.0 }
 0x110   :  { %v356_v34 = vpack.c.bf16 %v338_v31, %v337_v30 }
 0x111   :  { %v355_v35 = vpack.c.bf16 %v336_v33, %v335_v32  ;;  %v1705_v36 = vpop.f32.mrb[28].mxu0 }
 0x112   :  { %v305_v37 = vadd.f32 %v1705_v36, %v2174_v0  ;;  %v296_v38 = vpop.f32.mrb[29].mxu0 }
 0x113   :  { %v297_v39 = vadd.f32 %v2174_v0, %v296_v38  ;;  %v1706_v40 = vpop.f32.mrb[30].mxu0  ;;  %1747 = vmatprep.mubr.bf16.mxu1 %v355_v35 }
 0x114   :  { %v308_v41 = vadd.f32 %v1706_v40, %v2174_v0  ;;  %v299_v42 = vpop.f32.mrb[31].mxu0  ;;  %1748 = vmatmul.mubr.bf16.gmra.mrb[24].mxu1 %v356_v34  ;;  %v341_v44 = vmax.f32 %v305_v37, 0.0 }
 0x115   :  { %v300_v43 = vadd.f32 %v2174_v0, %v299_v42  ;;  %v339_v46 = vmax.f32 %v297_v39, 0.0  ;;  %v1885_v0 = vld [vmem:[%s2454_s8 + $0x8] sm:$0xff]  }
 0x116   :  { %v342_v45 = vmax.f32 %v308_v41, 0.0  ;;  %1852 = vmatprep.subr.bf16.mxu1 %v1885_v0 }
 0x117   :  { %v340_v47 = vmax.f32 %v300_v43, 0.0  ;;  %1860 = vmatpush3.bf16.msra.mxu1 %v1885_v0 }
 0x118   :  { %v358_v48 = vpack.c.bf16 %v342_v45, %v341_v44  ;;  %1853 = vmatprep.subr.bf16.mxu1 %v1886_v52 }
 0x119   :  { %v357_v49 = vpack.c.bf16 %v340_v47, %v339_v46 }
 0x11b   :  { %1751 = vmatprep.mubr.bf16.mxu1 %v357_v49  ;;  %1861 = vmatpush3.bf16.msra.mxu1 %v1886_v52 }
 0x11c   :  { %1752 = vmatmul.mubr.bf16.gmra.mrb[28].mxu1 %v358_v48  ;;  %1854 = vmatprep.subr.bf16.mxu1 %v2223_v53 }
 0x11f   :  { %1862 = vmatpush3.bf16.msra.mxu1 %v2223_v53 }
 0x120   :  { %1855 = vmatprep.subr.bf16.mxu1 %v2229_v54 }
 0x123   :  { %1863 = vmatpush3.bf16.msra.mxu1 %v2229_v54 }
 0x124   :  { %1856 = vmatprep.subr.bf16.mxu1 %v2236_v55 }
 0x127   :  { %1864 = vmatpush3.bf16.msra.mxu1 %v2236_v55 }
 0x1b7   :  { %v1725_v57 = vpop.f32.mrb[0].mxu1 }
 0x1b8   :  { %v473_v58 = vadd.f32 %v1725_v57, %v2244_v56  ;;  %v464_v59 = vpop.f32.mrb[1].mxu1 }
 0x1b9   :  { %v465_v60 = vadd.f32 %v2244_v56, %v464_v59  ;;  %v1726_v61 = vpop.f32.mrb[2].mxu1 }
 0x1ba   :  { %v476_v62 = vadd.f32 %v1726_v61, %v2244_v56  ;;  %v467_v63 = vpop.f32.mrb[3].mxu1  ;;  %v593_v2 = vmax.f32 %v473_v58, 0.0 }
 0x1bb   :  { %v468_v1 = vadd.f32 %v2244_v56, %v467_v63  ;;  %v591_v4 = vmax.f32 %v465_v60, 0.0 }
 0x1bc   :  { %v594_v3 = vmax.f32 %v476_v62, 0.0 }
 0x1bd   :  { %v592_v5 = vmax.f32 %v468_v1, 0.0 }
 0x1be   :  { %v624_v6 = vpack.c.bf16 %v594_v3, %v593_v2 }
 0x1bf   :  { %v623_v7 = vpack.c.bf16 %v592_v5, %v591_v4  ;;  %v1729_v8 = vpop.f32.mrb[4].mxu1 }
 0x1c0   :  { %v489_v9 = vadd.f32 %v1729_v8, %v2244_v56  ;;  %v480_v10 = vpop.f32.mrb[5].mxu1 }
 0x1c1   :  { %v481_v11 = vadd.f32 %v2244_v56, %v480_v10  ;;  %v1730_v12 = vpop.f32.mrb[6].mxu1  ;;  %1771 = vmatprep.mubr.bf16.mxu0 %v623_v7 }
 0x1c2   :  { %v492_v13 = vadd.f32 %v1730_v12, %v2244_v56  ;;  %v483_v14 = vpop.f32.mrb[7].mxu1  ;;  %1772 = vmatmul.mubr.bf16.vlgmr.msra.gmra.mrb[32].mxu0 %v624_v6  ;;  %v597_v16 = vmax.f32 %v489_v9, 0.0 }
 0x1c3   :  { %v484_v15 = vadd.f32 %v2244_v56, %v483_v14  ;;  %1804 = vmatpush3.bf16.msra.mxu0 %v1884_v51  ;;  %v595_v18 = vmax.f32 %v481_v11, 0.0 }
 0x1c4   :  { %v598_v17 = vmax.f32 %v492_v13, 0.0  ;;  %1805 = vmatprep.subr.bf16.mxu0 %v1885_v0 }
 0x1c5   :  { %v596_v19 = vmax.f32 %v484_v15, 0.0 }
 0x1c6   :  { %v626_v20 = vpack.c.bf16 %v598_v17, %v597_v16 }
 0x1c7   :  { %v625_v21 = vpack.c.bf16 %v596_v19, %v595_v18  ;;  %v1733_v22 = vpop.f32.mrb[8].mxu1  ;;  %1806 = vmatpush3.bf16.msra.mxu0 %v1885_v0 }
 0x1c8   :  { %v505_v23 = vadd.f32 %v1733_v22, %v2244_v56  ;;  %v496_v24 = vpop.f32.mrb[9].mxu1  ;;  %1807 = vmatprep.subr.bf16.mxu0 %v1886_v52 }
 0x1c9   :  { %v497_v25 = vadd.f32 %v2244_v56, %v496_v24  ;;  %v1734_v26 = vpop.f32.mrb[10].mxu1  ;;  %1775 = vmatprep.mubr.bf16.mxu0 %v625_v21 }
 0x1ca   :  { %v508_v27 = vadd.f32 %v1734_v26, %v2244_v56  ;;  %v499_v28 = vpop.f32.mrb[11].mxu1  ;;  %1776 = vmatmul.mubr.bf16.gmra.mrb[36].mxu0 %v626_v20  ;;  %v601_v30 = vmax.f32 %v505_v23, 0.0 }
 0x1cb   :  { %v500_v29 = vadd.f32 %v2244_v56, %v499_v28  ;;  %1808 = vmatpush3.bf16.msra.mxu0 %v1886_v52  ;;  %v599_v32 = vmax.f32 %v497_v25, 0.0 }
 0x1cc   :  { %v602_v31 = vmax.f32 %v508_v27, 0.0  ;;  %1809 = vmatprep.subr.bf16.mxu0 %v2223_v53 }
 0x1cd   :  { %v600_v33 = vmax.f32 %v500_v29, 0.0 }
 0x1ce   :  { %v628_v34 = vpack.c.bf16 %v602_v31, %v601_v30 }
 0x1cf   :  { %v627_v35 = vpack.c.bf16 %v600_v33, %v599_v32  ;;  %v1737_v36 = vpop.f32.mrb[12].mxu1  ;;  %1810 = vmatpush3.bf16.msra.mxu0 %v2223_v53 }
 0x1d0   :  { %v521_v37 = vadd.f32 %v1737_v36, %v2244_v56  ;;  %v512_v38 = vpop.f32.mrb[13].mxu1  ;;  %1811 = vmatprep.subr.bf16.mxu0 %v2229_v54 }
 0x1d1   :  { %v513_v39 = vadd.f32 %v2244_v56, %v512_v38  ;;  %v1738_v40 = vpop.f32.mrb[14].mxu1  ;;  %1779 = vmatprep.mubr.bf16.mxu0 %v627_v35 }
 0x1d2   :  { %v524_v41 = vadd.f32 %v1738_v40, %v2244_v56  ;;  %v515_v42 = vpop.f32.mrb[15].mxu1  ;;  %1780 = vmatmul.mubr.bf16.gmra.mrb[40].mxu0 %v628_v34  ;;  %v605_v44 = vmax.f32 %v521_v37, 0.0 }
 0x1d3   :  { %v516_v43 = vadd.f32 %v2244_v56, %v515_v42  ;;  %1812 = vmatpush3.bf16.msra.mxu0 %v2229_v54  ;;  %v603_v46 = vmax.f32 %v513_v39, 0.0 }
 0x1d4   :  { %v606_v45 = vmax.f32 %v524_v41, 0.0  ;;  %1813 = vmatprep.subr.bf16.mxu0 %v2236_v55 }
 0x1d5   :  { %v604_v47 = vmax.f32 %v516_v43, 0.0  ;;  %v1890_v43 = vld [vmem:[%s2454_s8 + $0x30] sm:$0xff]  }
 0x1d6   :  { %v630_v48 = vpack.c.bf16 %v606_v45, %v605_v44  ;;  %1857 = vmatprep.subr.bf16.mxu1 %v1890_v43  ;;  %v2293_v44 = vld [vmem:[%s2456_s7] ss:$0 sm:$0xff] }
 0x1d7   :  { %v629_v49 = vpack.c.bf16 %v604_v47, %v603_v46  ;;  %v1741_v50 = vpop.f32.mrb[16].mxu1  ;;  %1814 = vmatpush3.bf16.msra.mxu0 %v2236_v55  ;;  %1865 = vmatpush3.bf16.msra.mxu1 %v1890_v43 }
 0x1d8   :  { %v537_v51 = vadd.f32 %v1741_v50, %v2244_v56  ;;  %v528_v0 = vpop.f32.mrb[17].mxu1  ;;  %1815 = vmatprep.subr.bf16.mxu0 %v1890_v43 }
 0x1d9   :  { %v529_v52 = vadd.f32 %v2244_v56, %v528_v0  ;;  %v1742_v53 = vpop.f32.mrb[18].mxu1  ;;  %1783 = vmatprep.mubr.bf16.mxu0 %v629_v49 }
 0x1da   :  { %v540_v54 = vadd.f32 %v1742_v53, %v2244_v56  ;;  %v531_v57 = vpop.f32.mrb[19].mxu1  ;;  %1784 = vmatmul.mubr.bf16.gmra.mrb[44].mxu0 %v630_v48  ;;  %v609_v59 = vmax.f32 %v537_v51, 0.0 }
 0x1db   :  { %v532_v58 = vadd.f32 %v2244_v56, %v531_v57  ;;  %v607_v61 = vmax.f32 %v529_v52, 0.0  ;;  %1816 = vmatpush3.bf16.msra.mxu0 %v1890_v43 }
 0x1dc   :  { %v610_v60 = vmax.f32 %v540_v54, 0.0 }
 0x1dd   :  { %v608_v62 = vmax.f32 %v532_v58, 0.0 }
 0x1de   :  { %v632_v63 = vpack.c.bf16 %v610_v60, %v609_v59 }
 0x1df   :  { %v631_v1 = vpack.c.bf16 %v608_v62, %v607_v61  ;;  %v1745_v55 = vpop.f32.mrb[20].mxu1 }
 0x1e0   :  { %v553_v2 = vadd.f32 %v1745_v55, %v2244_v56  ;;  %v544_v3 = vpop.f32.mrb[21].mxu1 }
 0x1e1   :  { %v545_v4 = vadd.f32 %v2244_v56, %v544_v3  ;;  %v1746_v5 = vpop.f32.mrb[22].mxu1  ;;  %1787 = vmatprep.mubr.bf16.mxu0 %v631_v1 }
 0x1e2   :  { %v556_v6 = vadd.f32 %v1746_v5, %v2244_v56  ;;  %v547_v7 = vpop.f32.mrb[23].mxu1  ;;  %1788 = vmatmul.mubr.bf16.gmra.mrb[48].mxu0 %v632_v63  ;;  %v613_v9 = vmax.f32 %v553_v2, 0.0 }
 0x1e3   :  { %v548_v8 = vadd.f32 %v2244_v56, %v547_v7  ;;  %v611_v11 = vmax.f32 %v545_v4, 0.0 }
 0x1e4   :  { %v614_v10 = vmax.f32 %v556_v6, 0.0 }
 0x1e5   :  { %v612_v12 = vmax.f32 %v548_v8, 0.0 }
 0x1e6   :  { %v634_v13 = vpack.c.bf16 %v614_v10, %v613_v9 }
 0x1e7   :  { %v633_v14 = vpack.c.bf16 %v612_v12, %v611_v11  ;;  %v1749_v15 = vpop.f32.mrb[24].mxu1 }
 0x1e8   :  { %v569_v16 = vadd.f32 %v1749_v15, %v2244_v56  ;;  %v560_v17 = vpop.f32.mrb[25].mxu1 }
 0x1e9   :  { %v561_v18 = vadd.f32 %v2244_v56, %v560_v17  ;;  %v1750_v19 = vpop.f32.mrb[26].mxu1  ;;  %1791 = vmatprep.mubr.bf16.mxu0 %v633_v14 }
 0x1ea   :  { %v572_v20 = vadd.f32 %v1750_v19, %v2244_v56  ;;  %v563_v21 = vpop.f32.mrb[27].mxu1  ;;  %1792 = vmatmul.mubr.bf16.gmra.mrb[52].mxu0 %v634_v13  ;;  %v617_v23 = vmax.f32 %v569_v16, 0.0 }
 0x1eb   :  { %v564_v22 = vadd.f32 %v2244_v56, %v563_v21  ;;  %v615_v25 = vmax.f32 %v561_v18, 0.0 }
 0x1ec   :  { %v618_v24 = vmax.f32 %v572_v20, 0.0 }
 0x1ed   :  { %v616_v26 = vmax.f32 %v564_v22, 0.0 }
 0x1ee   :  { %v636_v27 = vpack.c.bf16 %v618_v24, %v617_v23 }
 0x1ef   :  { %v635_v28 = vpack.c.bf16 %v616_v26, %v615_v25  ;;  %v1753_v29 = vpop.f32.mrb[28].mxu1 }
 0x1f0   :  { %v585_v30 = vadd.f32 %v1753_v29, %v2244_v56  ;;  %v576_v31 = vpop.f32.mrb[29].mxu1 }
 0x1f1   :  { %v577_v32 = vadd.f32 %v2244_v56, %v576_v31  ;;  %v1754_v33 = vpop.f32.mrb[30].mxu1  ;;  %1795 = vmatprep.mubr.bf16.mxu0 %v635_v28 }
 0x1f2   :  { %v588_v34 = vadd.f32 %v1754_v33, %v2244_v56  ;;  %v579_v35 = vpop.f32.mrb[31].mxu1  ;;  %1796 = vmatmul.mubr.bf16.gmra.mrb[56].mxu0 %v636_v27  ;;  %v621_v37 = vmax.f32 %v585_v30, 0.0 }
 0x1f3   :  { %v580_v36 = vadd.f32 %v2244_v56, %v579_v35  ;;  %v619_v39 = vmax.f32 %v577_v32, 0.0  ;;  %v1891_v56 = vld [vmem:[%s2454_s8 + $0x38] sm:$0xff]  }
 0x1f4   :  { %v622_v38 = vmax.f32 %v588_v34, 0.0  ;;  %1817 = vmatprep.subr.bf16.mxu0 %v1891_v56  ;;  %1858 = vmatprep.subr.bf16.mxu1 %v1891_v56 }
 0x1f5   :  { %v620_v40 = vmax.f32 %v580_v36, 0.0  ;;  %1818 = vmatpush3.bf16.msra.mxu0 %v1891_v56  ;;  %1866 = vmatpush3.bf16.msra.mxu1 %v1891_v56 }
 0x1f6   :  { %v638_v41 = vpack.c.bf16 %v622_v38, %v621_v37 }
 0x1f7   :  { %v637_v42 = vpack.c.bf16 %v620_v40, %v619_v39 }
 0x1f9   :  { %1799 = vmatprep.mubr.bf16.mxu0 %v637_v42 }
 0x1fa   :  { %1800 = vmatmul.mubr.bf16.gmra.mrb[60].mxu0 %v638_v41 }
 0x295   :  { %v1773_v45 = vpop.f32.mrb[32].mxu0 }
 0x296   :  { %v753_v46 = vadd.f32 %v1773_v45, %v2293_v44  ;;  %v744_v47 = vpop.f32.mrb[33].mxu0 }
 0x297   :  { %v745_v48 = vadd.f32 %v2293_v44, %v744_v47  ;;  %v1774_v49 = vpop.f32.mrb[34].mxu0 }
 0x298   :  { %v756_v50 = vadd.f32 %v1774_v49, %v2293_v44  ;;  %v747_v51 = vpop.f32.mrb[35].mxu0  ;;  %v873_v52 = vmax.f32 %v753_v46, 0.0 }
 0x299   :  { %v748_v0 = vadd.f32 %v2293_v44, %v747_v51  ;;  %v871_v54 = vmax.f32 %v745_v48, 0.0 }
 0x29a   :  { %v874_v53 = vmax.f32 %v756_v50, 0.0 }
 0x29b   :  { %v872_v57 = vmax.f32 %v748_v0, 0.0 }
 0x29c   :  { %v904_v58 = vpack.c.bf16 %v874_v53, %v873_v52 }
 0x29d   :  { %v903_v59 = vpack.c.bf16 %v872_v57, %v871_v54  ;;  %v1777_v60 = vpop.f32.mrb[36].mxu0 }
 0x29e   :  { %v769_v61 = vadd.f32 %v1777_v60, %v2293_v44  ;;  %v760_v62 = vpop.f32.mrb[37].mxu0 }
 0x29f   :  { %v761_v63 = vadd.f32 %v2293_v44, %v760_v62  ;;  %v1778_v1 = vpop.f32.mrb[38].mxu0  ;;  %1819 = vmatprep.mubr.bf16.mxu0 %v903_v59 }
 0x2a0   :  { %v772_v55 = vadd.f32 %v1778_v1, %v2293_v44  ;;  %v763_v2 = vpop.f32.mrb[39].mxu0  ;;  %1820 = vmatmul.mubr.bf16.vlgmr.msra.gmra.mrb[64].mxu0 %v904_v58  ;;  %v877_v4 = vmax.f32 %v769_v61, 0.0 }
 0x2a1   :  { %v764_v3 = vadd.f32 %v2293_v44, %v763_v2  ;;  %v875_v6 = vmax.f32 %v761_v63, 0.0 }
 0x2a2   :  { %v878_v5 = vmax.f32 %v772_v55, 0.0 }
 0x2a3   :  { %v876_v7 = vmax.f32 %v764_v3, 0.0 }
 0x2a4   :  { %v906_v8 = vpack.c.bf16 %v878_v5, %v877_v4 }
 0x2a5   :  { %v905_v9 = vpack.c.bf16 %v876_v7, %v875_v6  ;;  %v1781_v10 = vpop.f32.mrb[40].mxu0 }
 0x2a6   :  { %v785_v11 = vadd.f32 %v1781_v10, %v2293_v44  ;;  %v776_v12 = vpop.f32.mrb[41].mxu0 }
 0x2a7   :  { %v777_v13 = vadd.f32 %v2293_v44, %v776_v12  ;;  %v1782_v14 = vpop.f32.mrb[42].mxu0  ;;  %1823 = vmatprep.mubr.bf16.mxu1 %v905_v9 }
 0x2a8   :  { %v788_v15 = vadd.f32 %v1782_v14, %v2293_v44  ;;  %v779_v16 = vpop.f32.mrb[43].mxu0  ;;  %1824 = vmatmul.mubr.bf16.vlgmr.msra.gmra.mrb[32].mxu1 %v906_v8  ;;  %v881_v18 = vmax.f32 %v785_v11, 0.0 }
 0x2a9   :  { %v780_v17 = vadd.f32 %v2293_v44, %v779_v16  ;;  %v879_v20 = vmax.f32 %v777_v13, 0.0 }
 0x2aa   :  { %v882_v19 = vmax.f32 %v788_v15, 0.0 }
 0x2ab   :  { %v880_v21 = vmax.f32 %v780_v17, 0.0 }
 0x2ac   :  { %v908_v22 = vpack.c.bf16 %v882_v19, %v881_v18 }
 0x2ad   :  { %v907_v23 = vpack.c.bf16 %v880_v21, %v879_v20  ;;  %v1785_v24 = vpop.f32.mrb[44].mxu0 }
 0x2ae   :  { %v801_v25 = vadd.f32 %v1785_v24, %v2293_v44  ;;  %v792_v26 = vpop.f32.mrb[45].mxu0 }
 0x2af   :  { %v793_v27 = vadd.f32 %v2293_v44, %v792_v26  ;;  %v1786_v28 = vpop.f32.mrb[46].mxu0  ;;  %1827 = vmatprep.mubr.bf16.mxu1 %v907_v23 }
 0x2b0   :  { %v804_v29 = vadd.f32 %v1786_v28, %v2293_v44  ;;  %v795_v30 = vpop.f32.mrb[47].mxu0  ;;  %1828 = vmatmul.mubr.bf16.gmra.mrb[36].mxu1 %v908_v22  ;;  %v885_v32 = vmax.f32 %v801_v25, 0.0 }
 0x2b1   :  { %v796_v31 = vadd.f32 %v2293_v44, %v795_v30  ;;  %v883_v34 = vmax.f32 %v793_v27, 0.0 }
 0x2b2   :  { %v886_v33 = vmax.f32 %v804_v29, 0.0 }
 0x2b3   :  { %v884_v35 = vmax.f32 %v796_v31, 0.0  ;;  %v2330_v31 = vld [vmem:[%s2457_s9] ss:$0 sm:$0xff] }
 0x2b4   :  { %v910_v36 = vpack.c.bf16 %v886_v33, %v885_v32 }
 0x2b5   :  { %v909_v37 = vpack.c.bf16 %v884_v35, %v883_v34  ;;  %v1789_v38 = vpop.f32.mrb[48].mxu0 }
 0x2b6   :  { %v817_v39 = vadd.f32 %v1789_v38, %v2293_v44  ;;  %v808_v40 = vpop.f32.mrb[49].mxu0 }
 0x2b7   :  { %v809_v41 = vadd.f32 %v2293_v44, %v808_v40  ;;  %v1790_v42 = vpop.f32.mrb[50].mxu0  ;;  %1831 = vmatprep.mubr.bf16.mxu1 %v909_v37 }
 0x2b8   :  { %v820_v43 = vadd.f32 %v1790_v42, %v2293_v44  ;;  %v811_v56 = vpop.f32.mrb[51].mxu0  ;;  %1832 = vmatmul.mubr.bf16.gmra.mrb[40].mxu1 %v910_v36  ;;  %v889_v46 = vmax.f32 %v817_v39, 0.0 }
 0x2b9   :  { %v812_v45 = vadd.f32 %v2293_v44, %v811_v56  ;;  %v887_v48 = vmax.f32 %v809_v41, 0.0 }
 0x2ba   :  { %v890_v47 = vmax.f32 %v820_v43, 0.0 }
 0x2bb   :  { %v888_v49 = vmax.f32 %v812_v45, 0.0 }
 0x2bc   :  { %v912_v50 = vpack.c.bf16 %v890_v47, %v889_v46 }
 0x2bd   :  { %v911_v51 = vpack.c.bf16 %v888_v49, %v887_v48  ;;  %v1793_v0 = vpop.f32.mrb[52].mxu0  ;;  %v2343_v48 = vstv %s2458_s0 }
 0x2be   :  { %v833_v52 = vadd.f32 %v1793_v0, %v2293_v44  ;;  %v824_v53 = vpop.f32.mrb[53].mxu0 }
 0x2bf   :  { %v825_v54 = vadd.f32 %v2293_v44, %v824_v53  ;;  %v1794_v57 = vpop.f32.mrb[54].mxu0  ;;  %1835 = vmatprep.mubr.bf16.mxu1 %v911_v51 }
 0x2c0   :  { %v836_v58 = vadd.f32 %v1794_v57, %v2293_v44  ;;  %v827_v59 = vpop.f32.mrb[55].mxu0  ;;  %1836 = vmatmul.mubr.bf16.gmra.mrb[44].mxu1 %v912_v50  ;;  %v893_v61 = vmax.f32 %v833_v52, 0.0 }
 0x2c1   :  { %v828_v60 = vadd.f32 %v2293_v44, %v827_v59  ;;  %v891_v63 = vmax.f32 %v825_v54, 0.0 }
 0x2c2   :  { %v894_v62 = vmax.f32 %v836_v58, 0.0 }
 0x2c3   :  { %v892_v1 = vmax.f32 %v828_v60, 0.0 }
 0x2c4   :  { %v914_v55 = vpack.c.bf16 %v894_v62, %v893_v61 }
 0x2c5   :  { %v913_v2 = vpack.c.bf16 %v892_v1, %v891_v63  ;;  %v1797_v3 = vpop.f32.mrb[56].mxu0 }
 0x2c6   :  { %v849_v4 = vadd.f32 %v1797_v3, %v2293_v44  ;;  %v840_v5 = vpop.f32.mrb[57].mxu0 }
 0x2c7   :  { %v841_v6 = vadd.f32 %v2293_v44, %v840_v5  ;;  %v1798_v7 = vpop.f32.mrb[58].mxu0  ;;  %1839 = vmatprep.mubr.bf16.mxu1 %v913_v2 }
 0x2c8   :  { %v852_v8 = vadd.f32 %v1798_v7, %v2293_v44  ;;  %v843_v9 = vpop.f32.mrb[59].mxu0  ;;  %1840 = vmatmul.mubr.bf16.gmra.mrb[48].mxu1 %v914_v55  ;;  %v897_v11 = vmax.f32 %v849_v4, 0.0 }
 0x2c9   :  { %v844_v10 = vadd.f32 %v2293_v44, %v843_v9  ;;  %v895_v13 = vmax.f32 %v841_v6, 0.0 }
 0x2ca   :  { %v898_v12 = vmax.f32 %v852_v8, 0.0 }
 0x2cb   :  { %v896_v14 = vmax.f32 %v844_v10, 0.0 }
 0x2cc   :  { %v916_v15 = vpack.c.bf16 %v898_v12, %v897_v11 }
 0x2cd   :  { %v915_v16 = vpack.c.bf16 %v896_v14, %v895_v13  ;;  %v1801_v17 = vpop.f32.mrb[60].mxu0 }
 0x2ce   :  { %v865_v18 = vadd.f32 %v1801_v17, %v2293_v44  ;;  %v856_v19 = vpop.f32.mrb[61].mxu0 }
 0x2cf   :  { %v857_v20 = vadd.f32 %v2293_v44, %v856_v19  ;;  %v1802_v21 = vpop.f32.mrb[62].mxu0  ;;  %1843 = vmatprep.mubr.bf16.mxu1 %v915_v16 }
 0x2d0   :  { %v868_v22 = vadd.f32 %v1802_v21, %v2293_v44  ;;  %v859_v23 = vpop.f32.mrb[63].mxu0  ;;  %1844 = vmatmul.mubr.bf16.gmra.mrb[52].mxu1 %v916_v15  ;;  %v901_v25 = vmax.f32 %v865_v18, 0.0 }
 0x2d1   :  { %v860_v24 = vadd.f32 %v2293_v44, %v859_v23  ;;  %v899_v27 = vmax.f32 %v857_v20, 0.0 }
 0x2d2   :  { %v902_v26 = vmax.f32 %v868_v22, 0.0 }
 0x2d3   :  { %v900_v28 = vmax.f32 %v860_v24, 0.0 }
 0x2d4   :  { %v918_v29 = vpack.c.bf16 %v902_v26, %v901_v25 }
 0x2d5   :  { %v917_v30 = vpack.c.bf16 %v900_v28, %v899_v27 }
 0x2d7   :  { %1847 = vmatprep.mubr.bf16.mxu1 %v917_v30 }
 0x2d8   :  { %1848 = vmatmul.mubr.bf16.gmra.mrb[56].mxu1 %v918_v29 }
 0x373   :  { %v1821_v32 = vpop.f32.mrb[64].mxu0 }
 0x374   :  { %v1033_v33 = vadd.f32 %v1821_v32, %v2330_v31  ;;  %v1024_v34 = vpop.f32.mrb[65].mxu0 }
 0x375   :  { %v1025_v35 = vadd.f32 %v2330_v31, %v1024_v34  ;;  %v1822_v44 = vpop.f32.mrb[66].mxu0 }
 0x376   :  { %1892 = vtanh.f32 %v1033_v33  ;;  %v1036_v36 = vadd.f32 %v1822_v44, %v2330_v31  ;;  %v1027_v37 = vpop.f32.mrb[67].mxu0 }
 0x377   :  { %1894 = vtanh.f32 %v1025_v35  ;;  %v1028_v38 = vadd.f32 %v2330_v31, %v1027_v37 }
 0x378   :  { %1896 = vtanh.f32 %v1036_v36 }
 0x379   :  { %1898 = vtanh.f32 %v1028_v38 }
 0x37b   :  { %v1825_v39 = vpop.f32.mrb[32].mxu1 }
 0x37c   :  { %v1049_v40 = vadd.f32 %v1825_v39, %v2330_v31  ;;  %v1040_v41 = vpop.f32.mrb[33].mxu1 }
 0x37d   :  { %v1041_v42 = vadd.f32 %v2330_v31, %v1040_v41  ;;  %v1826_v43 = vpop.f32.mrb[34].mxu1 }
 0x37e   :  { %1900 = vtanh.f32 %v1049_v40  ;;  %v1052_v56 = vadd.f32 %v1826_v43, %v2330_v31  ;;  %v1043_v45 = vpop.f32.mrb[35].mxu1 }
 0x37f   :  { %1902 = vtanh.f32 %v1041_v42  ;;  %v1044_v46 = vadd.f32 %v2330_v31, %v1043_v45 }
 0x380   :  { %v1893_v47 = vpop.eup %1892  ;;  %1904 = vtanh.f32 %v1052_v56 }
 0x381   :  { %v1895_v49 = vpop.eup %1894  ;;  %1906 = vtanh.f32 %v1044_v46  ;;  %v1186_v0 = vmul.f32 %v1893_v47, %v2343_v48 }
 0x382   :  { %v1897_v50 = vpop.eup %1896  ;;  %v1184_v54 = vmul.f32 %v1895_v49, %v2343_v48 }
 0x383   :  { %v1899_v51 = vpop.eup %1898  ;;  %v1187_v52 = vmul.f32 %v1897_v50, %v2343_v48  ;;  %v1829_v53 = vpop.f32.mrb[36].mxu1 }
 0x384   :  { %v1185_v57 = vmul.f32 %v1899_v51, %v2343_v48  ;;  %v1065_v58 = vadd.f32 %v1829_v53, %v2330_v31  ;;  %v1056_v59 = vpop.f32.mrb[37].mxu1 }
 0x385   :  { %v1497_v60 = vpack.c.bf16 %v1187_v52, %v1186_v0  ;;  %v1057_v61 = vadd.f32 %v2330_v31, %v1056_v59  ;;  %v1830_v62 = vpop.f32.mrb[38].mxu1 }
 0x386   :  { %v1492_v63 = vpack.c.bf16 %v1185_v57, %v1184_v54  ;;  %1908 = vtanh.f32 %v1065_v58  ;;  %v1068_v1 = vadd.f32 %v1830_v62, %v2330_v31  ;;  %v1059_v55 = vpop.f32.mrb[39].mxu1 }
 0x387   :  { %1569 = vst [vmem:[%s2459_s10 + $0x8] sm:$0xff] %v1497_v60   ;;  %1910 = vtanh.f32 %v1057_v61  ;;  %v1060_v2 = vadd.f32 %v2330_v31, %v1059_v55 }
 0x388   :  { %v1901_v3 = vpop.eup %1900  ;;  %1493 = vst [vmem:[%s2459_s10] sm:$0xff] %v1492_v63   ;;  %1912 = vtanh.f32 %v1068_v1 }
 0x389   :  { %v1903_v4 = vpop.eup %1902  ;;  %1914 = vtanh.f32 %v1060_v2  ;;  %v1190_v7 = vmul.f32 %v1901_v3, %v2343_v48 }
 0x38a   :  { %v1905_v5 = vpop.eup %1904  ;;  %v1188_v10 = vmul.f32 %v1903_v4, %v2343_v48 }
 0x38b   :  { %v1907_v6 = vpop.eup %1906  ;;  %v1191_v8 = vmul.f32 %v1905_v5, %v2343_v48  ;;  %v1833_v9 = vpop.f32.mrb[40].mxu1 }
 0x38c   :  { %v1189_v11 = vmul.f32 %v1907_v6, %v2343_v48  ;;  %v1081_v12 = vadd.f32 %v1833_v9, %v2330_v31  ;;  %v1072_v13 = vpop.f32.mrb[41].mxu1 }
 0x38d   :  { %v1507_v14 = vpack.c.bf16 %v1191_v8, %v1190_v7  ;;  %v1073_v15 = vadd.f32 %v2330_v31, %v1072_v13  ;;  %v1834_v16 = vpop.f32.mrb[42].mxu1 }
 0x38e   :  { %v1502_v17 = vpack.c.bf16 %v1189_v11, %v1188_v10  ;;  %1916 = vtanh.f32 %v1081_v12  ;;  %v1084_v18 = vadd.f32 %v1834_v16, %v2330_v31  ;;  %v1075_v19 = vpop.f32.mrb[43].mxu1 }
 0x38f   :  { %1571 = vst [vmem:[%s2459_s10 + $0x18] sm:$0xff] %v1507_v14   ;;  %1918 = vtanh.f32 %v1073_v15  ;;  %v1076_v20 = vadd.f32 %v2330_v31, %v1075_v19 }
 0x390   :  { %v1909_v21 = vpop.eup %1908  ;;  %1570 = vst [vmem:[%s2459_s10 + $0x10] sm:$0xff] %v1502_v17   ;;  %1920 = vtanh.f32 %v1084_v18 }
 0x391   :  { %v1911_v22 = vpop.eup %1910  ;;  %1922 = vtanh.f32 %v1076_v20  ;;  %v1194_v25 = vmul.f32 %v1909_v21, %v2343_v48 }
 0x392   :  { %v1913_v23 = vpop.eup %1912  ;;  %v1192_v28 = vmul.f32 %v1911_v22, %v2343_v48 }
 0x393   :  { %v1915_v24 = vpop.eup %1914  ;;  %v1195_v26 = vmul.f32 %v1913_v23, %v2343_v48  ;;  %v1837_v27 = vpop.f32.mrb[44].mxu1 }
 0x394   :  { %v1193_v29 = vmul.f32 %v1915_v24, %v2343_v48  ;;  %v1097_v30 = vadd.f32 %v1837_v27, %v2330_v31  ;;  %v1088_v32 = vpop.f32.mrb[45].mxu1 }
 0x395   :  { %v1517_v33 = vpack.c.bf16 %v1195_v26, %v1194_v25  ;;  %v1089_v34 = vadd.f32 %v2330_v31, %v1088_v32  ;;  %v1838_v35 = vpop.f32.mrb[46].mxu1 }
 0x396   :  { %v1512_v44 = vpack.c.bf16 %v1193_v29, %v1192_v28  ;;  %1924 = vtanh.f32 %v1097_v30  ;;  %v1100_v36 = vadd.f32 %v1838_v35, %v2330_v31  ;;  %v1091_v37 = vpop.f32.mrb[47].mxu1 }
 0x397   :  { %1573 = vst [vmem:[%s2459_s10 + $0x28] sm:$0xff] %v1517_v33   ;;  %1926 = vtanh.f32 %v1089_v34  ;;  %v1092_v38 = vadd.f32 %v2330_v31, %v1091_v37 }
 0x398   :  { %v1917_v39 = vpop.eup %1916  ;;  %1572 = vst [vmem:[%s2459_s10 + $0x20] sm:$0xff] %v1512_v44   ;;  %1928 = vtanh.f32 %v1100_v36 }
 0x399   :  { %v1919_v40 = vpop.eup %1918  ;;  %1930 = vtanh.f32 %v1092_v38  ;;  %v1198_v43 = vmul.f32 %v1917_v39, %v2343_v48 }
 0x39a   :  { %v1921_v41 = vpop.eup %1920  ;;  %v1196_v46 = vmul.f32 %v1919_v40, %v2343_v48 }
 0x39b   :  { %v1923_v42 = vpop.eup %1922  ;;  %v1199_v56 = vmul.f32 %v1921_v41, %v2343_v48  ;;  %v1841_v45 = vpop.f32.mrb[48].mxu1 }
 0x39c   :  { %v1197_v47 = vmul.f32 %v1923_v42, %v2343_v48  ;;  %v1113_v49 = vadd.f32 %v1841_v45, %v2330_v31  ;;  %v1104_v50 = vpop.f32.mrb[49].mxu1 }
 0x39d   :  { %v1527_v51 = vpack.c.bf16 %v1199_v56, %v1198_v43  ;;  %v1105_v0 = vadd.f32 %v2330_v31, %v1104_v50  ;;  %v1842_v52 = vpop.f32.mrb[50].mxu1 }
 0x39e   :  { %v1522_v53 = vpack.c.bf16 %v1197_v47, %v1196_v46  ;;  %1932 = vtanh.f32 %v1113_v49  ;;  %v1116_v54 = vadd.f32 %v1842_v52, %v2330_v31  ;;  %v1107_v57 = vpop.f32.mrb[51].mxu1 }
 0x39f   :  { %1575 = vst [vmem:[%s2459_s10 + $0x38] sm:$0xff] %v1527_v51   ;;  %1934 = vtanh.f32 %v1105_v0  ;;  %v1108_v58 = vadd.f32 %v2330_v31, %v1107_v57 }
 0x3a0   :  { %v1925_v59 = vpop.eup %1924  ;;  %1574 = vst [vmem:[%s2459_s10 + $0x30] sm:$0xff] %v1522_v53   ;;  %1936 = vtanh.f32 %v1116_v54 }
 0x3a1   :  { %v1927_v60 = vpop.eup %1926  ;;  %1938 = vtanh.f32 %v1108_v58  ;;  %v1202_v63 = vmul.f32 %v1925_v59, %v2343_v48 }
 0x3a2   :  { %v1929_v61 = vpop.eup %1928  ;;  %v1200_v2 = vmul.f32 %v1927_v60, %v2343_v48 }
 0x3a3   :  { %v1931_v62 = vpop.eup %1930  ;;  %v1203_v1 = vmul.f32 %v1929_v61, %v2343_v48  ;;  %v1845_v55 = vpop.f32.mrb[52].mxu1 }
 0x3a4   :  { %v1201_v3 = vmul.f32 %v1931_v62, %v2343_v48  ;;  %v1129_v4 = vadd.f32 %v1845_v55, %v2330_v31  ;;  %v1120_v5 = vpop.f32.mrb[53].mxu1 }
 0x3a5   :  { %v1537_v6 = vpack.c.bf16 %v1203_v1, %v1202_v63  ;;  %v1121_v7 = vadd.f32 %v2330_v31, %v1120_v5  ;;  %v1846_v8 = vpop.f32.mrb[54].mxu1 }
 0x3a6   :  { %v1532_v9 = vpack.c.bf16 %v1201_v3, %v1200_v2  ;;  %1940 = vtanh.f32 %v1129_v4  ;;  %v1132_v10 = vadd.f32 %v1846_v8, %v2330_v31  ;;  %v1123_v11 = vpop.f32.mrb[55].mxu1 }
 0x3a7   :  { %1577 = vst [vmem:[%s2459_s10 + $0x48] sm:$0xff] %v1537_v6   ;;  %1942 = vtanh.f32 %v1121_v7  ;;  %v1124_v12 = vadd.f32 %v2330_v31, %v1123_v11 }
 0x3a8   :  { %v1933_v13 = vpop.eup %1932  ;;  %1576 = vst [vmem:[%s2459_s10 + $0x40] sm:$0xff] %v1532_v9   ;;  %1944 = vtanh.f32 %v1132_v10 }
 0x3a9   :  { %v1935_v14 = vpop.eup %1934  ;;  %1946 = vtanh.f32 %v1124_v12  ;;  %v1206_v17 = vmul.f32 %v1933_v13, %v2343_v48 }
 0x3aa   :  { %v1937_v15 = vpop.eup %1936  ;;  %v1204_v20 = vmul.f32 %v1935_v14, %v2343_v48 }
 0x3ab   :  { %v1939_v16 = vpop.eup %1938  ;;  %v1207_v18 = vmul.f32 %v1937_v15, %v2343_v48  ;;  %v1849_v19 = vpop.f32.mrb[56].mxu1 }
 0x3ac   :  { %v1205_v21 = vmul.f32 %v1939_v16, %v2343_v48  ;;  %v1145_v22 = vadd.f32 %v1849_v19, %v2330_v31  ;;  %v1136_v23 = vpop.f32.mrb[57].mxu1 }
 0x3ad   :  { %v1547_v24 = vpack.c.bf16 %v1207_v18, %v1206_v17  ;;  %v1137_v25 = vadd.f32 %v2330_v31, %v1136_v23  ;;  %v1850_v26 = vpop.f32.mrb[58].mxu1 }
 0x3ae   :  { %v1542_v27 = vpack.c.bf16 %v1205_v21, %v1204_v20  ;;  %1948 = vtanh.f32 %v1145_v22  ;;  %v1148_v28 = vadd.f32 %v1850_v26, %v2330_v31  ;;  %v1139_v29 = vpop.f32.mrb[59].mxu1 }
 0x3af   :  { %1579 = vst [vmem:[%s2459_s10 + $0x58] sm:$0xff] %v1547_v24   ;;  %1950 = vtanh.f32 %v1137_v25  ;;  %v1140_v30 = vadd.f32 %v2330_v31, %v1139_v29 }
 0x3b0   :  { %v1941_v32 = vpop.eup %1940  ;;  %1578 = vst [vmem:[%s2459_s10 + $0x50] sm:$0xff] %v1542_v27   ;;  %1952 = vtanh.f32 %v1148_v28 }
 0x3b1   :  { %v1943_v33 = vpop.eup %1942  ;;  %1954 = vtanh.f32 %v1140_v30  ;;  %v1210_v44 = vmul.f32 %v1941_v32, %v2343_v48 }
 0x3b2   :  { %v1945_v34 = vpop.eup %1944  ;;  %v1208_v37 = vmul.f32 %v1943_v33, %v2343_v48 }
 0x3b3   :  { %v1947_v35 = vpop.eup %1946  ;;  %v1211_v36 = vmul.f32 %v1945_v34, %v2343_v48 }
 0x3b4   :  { %v1209_v38 = vmul.f32 %v1947_v35, %v2343_v48 }
 0x3b5   :  { %v1557_v39 = vpack.c.bf16 %v1211_v36, %v1210_v44 }
 0x3b6   :  { %v1552_v31 = vpack.c.bf16 %v1209_v38, %v1208_v37 }
 0x3b7   :  { %1581 = vst [vmem:[%s2459_s10 + $0x68] sm:$0xff] %v1557_v39  }
 0x3b8   :  { %v1949_v40 = vpop.eup %1948  ;;  %1580 = vst [vmem:[%s2459_s10 + $0x60] sm:$0xff] %v1552_v31  }
 0x3b9   :  { %v1951_v41 = vpop.eup %1950  ;;  %v1214_v56 = vmul.f32 %v1949_v40, %v2343_v48 }
 0x3ba   :  { %v1953_v42 = vpop.eup %1952  ;;  %v1212_v46 = vmul.f32 %v1951_v41, %v2343_v48 }
 0x3bb   :  { %v1955_v43 = vpop.eup %1954  ;;  %v1215_v45 = vmul.f32 %v1953_v42, %v2343_v48 }
 0x3bc   :  { %v1213_v47 = vmul.f32 %v1955_v43, %v2343_v48 }
 0x3bd   :  { %v1567_v49 = vpack.c.bf16 %v1215_v45, %v1214_v56 }
 0x3be   :  { %v1562_v50 = vpack.c.bf16 %v1213_v47, %v1212_v46 }
 0x3bf   :  { %1583 = vst [vmem:[%s2459_s10 + $0x78] sm:$0xff] %v1567_v49  }
 0x3c0   :  { %1582 = vst [vmem:[%s2459_s10 + $0x70] sm:$0xff] %v1562_v50  }

</bundles_post_ra>
